<compile_context>
chip_gen: v7x
topology: tpu7x:2x2x1
jax: 0.10.0
libtpu: 0.0.40
codegen_flags: <defaults>
</compile_context>

<pallas_src>
import functools
import logging

import jax
import jax.numpy as jnp
from jax.experimental import pallas as pl
from jax.experimental.pallas import tpu as pltpu

logger = logging.getLogger(__name__)


def _round_up(x, m):
    return (x + m - 1) // m * m


# ---------------------------------------------------------------------------
# Forward kernel: y[n] = relu(w^T @ x[n] + b), x[n] viewed as (C, H*W).
# Layout: H*W on the 128-lane axis -> lane-dense stores, no NCHW transposes.
# ---------------------------------------------------------------------------
def _conv1x1_kernel(x_ref, wt_ref, b_ref, o_ref):
    # x_ref : (NB, C, T)     activation tile, T = H*W tile on lanes
    # wt_ref: (Cout, C)      transposed weight (tiny, resident every step)
    # b_ref : (Cout, 1)      bias column
    # o_ref : (NB, Cout, T)
    nb, c, _ = x_ref.shape
    wt = wt_ref[...]                          # native dtype: bf16 feeds MXU directly
    bias = b_ref[...].astype(jnp.float32)     # (Cout, 1)

    use_vpu = c <= 16
    if use_vpu:
        # Tiny contraction: unrolled VPU broadcast MAC (a K<=16 MXU matmul
        # would leave >95% of the MXU idle).  f32 upcast hoisted out of the
        # batch loop; it is mandatory on v5e anyway (no bf16 VPU).
        wt_f32 = wt.astype(jnp.float32)

    for bi in range(nb):
        x = x_ref[bi]                          # (C, T)
        if use_vpu:
            xf = x.astype(jnp.float32)
            acc = wt_f32[:, 0:1] * xf[0:1, :]
            for ci in range(1, c):
                acc = acc + wt_f32[:, ci:ci + 1] * xf[ci:ci + 1, :]
        else:
            # Real channel counts: MXU, native-dtype operands, f32 accumulate.
            acc = jnp.dot(wt, x, preferred_element_type=jnp.float32)
        o_ref[bi] = jnp.maximum(acc + bias, 0.0).astype(o_ref.dtype)


def _pick_lane_tile(hw_padded, c, cout, itemsize):
    """Largest lane tile (multiple of 128) whose double-buffered in+out blocks
    stay inside a conservative VMEM budget (v5e default scoped VMEM = 16 MiB,
    we budget half of it so the pipeline + output buffers always fit)."""
    budget = 8 * 1024 * 1024
    for cand in (2048, 1024, 512, 256, 128):
        if hw_padded % cand == 0 and (c + cout) * cand * itemsize * 2 <= budget:
            return cand
    return 128


def _pick_batch_block(n, per_batch_bytes):
    """How many batch elements per grid step, so per-step DMA stays >=~512 KiB
    (amortizes the ~0.35us per-step overhead) without blowing VMEM."""
    target = 512 * 1024
    budget = 8 * 1024 * 1024
    best = 1
    for nb in range(1, n + 1):
        if n % nb:
            continue
        if nb * per_batch_bytes * 2 > budget:   # x2 for double buffering
            break
        best = nb
        if nb * per_batch_bytes >= target:
            break
    return best


@jax.jit
def conv1x1_forward(x_nchw, w, b):
    """x_nchw: [N, C, H, W]; w: [C, Cout]; b: [Cout]. Returns [N, Cout, H, W]."""
    n, c, h, wd = x_nchw.shape
    cout = w.shape[1]
    hw = h * wd
    hw_pad = _round_up(hw, 128)          # lane-dense stores even for 7x7 maps

    x3 = x_nchw.reshape(n, c, hw)        # free reshape, no transpose
    if hw_pad != hw:
        x3 = jnp.pad(x3, ((0, 0), (0, 0), (0, hw_pad - hw)))
    wt = jnp.transpose(w)                # (Cout, C), tiny
    b2 = b.reshape(cout, 1)

    itemsize = jnp.dtype(x_nchw.dtype).itemsize
    hw_tile = _pick_lane_tile(hw_pad, c, cout, itemsize)
    nb = _pick_batch_block(n, (c + cout) * hw_tile * itemsize)
    grid = (n // nb, hw_pad // hw_tile)

    y3 = pl.pallas_call(
        _conv1x1_kernel,
        out_shape=jax.ShapeDtypeStruct((n, cout, hw_pad), x_nchw.dtype),
        grid=grid,
        in_specs=[
            pl.BlockSpec((nb, c, hw_tile), lambda i, t: (i, 0, t)),
            pl.BlockSpec((cout, c), lambda i, t: (0, 0)),
            pl.BlockSpec((cout, 1), lambda i, t: (0, 0)),
        ],
        out_specs=pl.BlockSpec((nb, cout, hw_tile), lambda i, t: (i, 0, t)),
        compiler_params=pltpu.CompilerParams(
            dimension_semantics=("parallel", "parallel")),
    )(x3, wt, b2)

    if hw_pad != hw:
        y3 = y3[:, :, :hw]
    return y3.reshape(n, cout, h, wd)


# ---------------------------------------------------------------------------
# EMA update kernel: out = mu * ema + (1 - mu) * new, one fused in-place sweep
# over the whole (flattened, lane-dense) parameter buffer.
# ---------------------------------------------------------------------------
_EMA_LANES = 1024       # lane-dense last dim (multiple of 128) -> unmasked stores
_EMA_ROW_TILE = 512     # 512 x 1024 x 4B = 2 MiB/block; 3 arrays x 2 bufs = 12 MiB
                        # -> fits v5e's 16 MiB default scoped VMEM, well under the
                        #    32 MiB default on v6e/v7x (no vmem_limit_bytes needed).


def _choose_row_tile(rows_needed):
    """rows_needed is a multiple of 8.  Use the full 512-row tile for large
    buffers; for small ones aim for >= 2 grid blocks so the 'parallel' axis can
    still be sharded across v7x's two TensorCores."""
    if rows_needed >= 2 * _EMA_ROW_TILE:
        return _EMA_ROW_TILE
    if rows_needed > 8:
        return _round_up((rows_needed + 1) // 2, 8)
    return 8


def _ema_kernel(mu_ref, ema_ref, new_ref, o_ref):
    mu = mu_ref[0]
    e = ema_ref[...].astype(jnp.float32)
    m = new_ref[...].astype(jnp.float32)
    o_ref[...] = (mu * e + (1.0 - mu) * m).astype(o_ref.dtype)


def _ema_pallas(mu_arr, flat_ema, flat_new, row_tile):
    rows, lanes = flat_ema.shape
    return pl.pallas_call(
        _ema_kernel,
        out_shape=jax.ShapeDtypeStruct((rows, lanes), flat_ema.dtype),
        grid=(rows // row_tile,),
        in_specs=[
            pl.BlockSpec(memory_space=pltpu.SMEM),               # mu scalar
            pl.BlockSpec((row_tile, lanes), lambda i: (i, 0)),   # ema (master)
            pl.BlockSpec((row_tile, lanes), lambda i: (i, 0)),   # new
        ],
        out_specs=pl.BlockSpec((row_tile, lanes), lambda i: (i, 0)),
        input_output_aliases={1: 0},   # in-place update of the EMA buffer
        compiler_params=pltpu.CompilerParams(dimension_semantics=("parallel",)),
    )(mu_arr, flat_ema, flat_new)


# ---------------------------------------------------------------------------
# ModelEMA equivalent
# ---------------------------------------------------------------------------
class ModelEMA:
    """JAX/Pallas port of the PyTorch ModelEMA wrapper.

    `init_params` is a dict {name: array} playing the role of
    module.state_dict().  All parameters live in a single flat, padded,
    lane-dense (rows, 1024) master buffer so update() is one fused,
    memory-bound, in-place Pallas sweep.
    """

    def __init__(self, init_params, mu):
        self.mu = float(mu)
        self._names = list(init_params.keys())

        # TODO(synk): mixed-dtype state dicts would need one flat buffer per
        # dtype; here every param is packed in the first param's dtype.
        first = jnp.asarray(init_params[self._names[0]])
        self._new_dtype = first.dtype
        # f32 master EMA buffer for sub-f32 float params: avoids repeated
        # round-to-bf16 bias when (1-mu) is below the bf16 ulp.
        if (jnp.issubdtype(first.dtype, jnp.floating)
                and jnp.dtype(first.dtype).itemsize < 4):
            self._master_dtype = jnp.float32
        else:
            self._master_dtype = first.dtype

        self._meta = {}
        off = 0
        for name in self._names:
            a = jnp.asarray(init_params[name])
            self._meta[name] = (off, int(a.size), tuple(a.shape), a.dtype)
            off += int(a.size)
        total = off

        rows_needed = _round_up(max(pl.cdiv(total, _EMA_LANES), 1), 8)
        self._row_tile = _choose_row_tile(rows_needed)
        self._rows = _round_up(rows_needed, self._row_tile)
        self._padded_total = self._rows * _EMA_LANES

        self._flat = self._pack(init_params, self._master_dtype)
        self._fwd_cache = None
        self._build_update_fns()

    # -- flat <-> dict -------------------------------------------------------
    def _pack(self, params, dtype):
        parts = [jnp.ravel(jnp.asarray(params[k])).astype(dtype)
                 for k in self._names]
        flat = parts[0] if len(parts) == 1 else jnp.concatenate(parts)
        pad = self._padded_total - flat.shape[0]
        if pad:
            flat = jnp.pad(flat, (0, pad))
        return flat.reshape(self._rows, _EMA_LANES)

    def pack_params(self, params):
        """Pack a state dict into the internal flat (rows, 1024) layout.
        Callers keeping training params in this layout can use
        `update_from_flat` and skip repacking entirely."""
        return self._pack(params, self._new_dtype)

    def state_dict(self):
        flat1d = self._flat.reshape(-1)
        out = {}
        for name in self._names:
            off, size, shape, dtype = self._meta[name]
            out[name] = flat1d[off:off + size].reshape(shape).astype(dtype)
        return out

    def _forward_params(self):
        # Cache only the two views forward needs; rebuilt lazily after update.
        if self._fwd_cache is None:
            flat1d = self._flat.reshape(-1)
            off_w, size_w, shape_w, dt_w = self._meta["weight"]
            off_b, size_b, shape_b, dt_b = self._meta["bias"]
            w = flat1d[off_w:off_w + size_w].reshape(shape_w).astype(dt_w)
            b = flat1d[off_b:off_b + size_b].reshape(shape_b).astype(dt_b)
            self._fwd_cache = (w, b)
        return self._fwd_cache

    # -- fused update functions (pack + EMA in ONE jitted dispatch) -----------
    def _build_update_fns(self):
        rows, lanes = self._rows, _EMA_LANES
        row_tile = self._row_tile
        padded_total = self._padded_total
        new_dtype = self._new_dtype

        def fused(flat_ema, mu_arr, *new_leaves):
            # Packing (ravel/concat/pad) fused with the EMA sweep: single
            # dispatch, single extra pass over the new params.
            # TODO(synk): eliminate the packing pass by DMA-ing per-parameter
            # HBM slices inside the kernel via PrefetchScalarGridSpec offsets.
            parts = [jnp.ravel(p).astype(new_dtype) for p in new_leaves]
            flat = parts[0] if len(parts) == 1 else jnp.concatenate(parts)
            pad = padded_total - flat.shape[0]
            if pad:
                flat = jnp.pad(flat, (0, pad))
            return _ema_pallas(mu_arr, flat_ema, flat.reshape(rows, lanes),
                               row_tile)

        def flat_only(flat_ema, mu_arr, flat_new):
            return _ema_pallas(mu_arr, flat_ema, flat_new, row_tile)

        self._update_fn = jax.jit(fused, donate_argnums=(0,))
        self._update_flat_fn = jax.jit(flat_only, donate_argnums=(0,))

    # -- forward (pass-through to the wrapped synthetic 1x1-conv module) ------
    def forward(self, x):
        w, b = self._forward_params()
        return conv1x1_forward(x, w, b)

    def __call__(self, x):
        return self.forward(x)

    def encode(self, x):
        return self.forward(x)

    def decode(self, x):
        return self.forward(x)

    # -- EMA update ------------------------------------------------------------
    @staticmethod
    def _effective_mu(mu, step):
        if step is None:
            return mu
        return min(mu, (1.0 + step) / (10.0 + step))

    def update(self, new_params, step=None):
        mu = self._effective_mu(self.mu, step)

        # Validate keys BEFORE the EMA buffer is donated to the jitted update.
        missing = [k for k in self._names if k not in new_params]
        if missing:
            raise ValueError(f"[ExponentialMovingAverage] missing keys {missing}")
        for name, name2 in zip(self._names, new_params.keys()):
            if name != name2:
                logger.warning(
                    "[ExponentialMovingAverage] not matched keys %s, %s",
                    name, name2)

        self._fwd_cache = None
        if step is not None and step < 0:
            # hard copy of the new parameters (rare path)
            self._flat = self._pack(new_params, self._master_dtype)
            return

        leaves = [jnp.asarray(new_params[k]) for k in self._names]
        mu_arr = jnp.asarray([mu], dtype=jnp.float32)
        self._flat = self._update_fn(self._flat, mu_arr, *leaves)

    def update_from_flat(self, flat_new, step=None):
        """Fast path: new params already in the flat (rows, 1024) layout ->
        the EMA sweep runs with zero repacking traffic."""
        mu = self._effective_mu(self.mu, step)
        self._fwd_cache = None
        if step is not None and step < 0:
            self._flat = flat_new.astype(self._master_dtype)
            return
        mu_arr = jnp.asarray([mu], dtype=jnp.float32)
        self._flat = self._update_flat_fn(self._flat, mu_arr, flat_new)


# ---------------------------------------------------------------------------
# Demo / self-check
# ---------------------------------------------------------------------------
if __name__ == "__main__":
    key = jax.random.PRNGKey(0)
    k_x, k_w1, k_b1, k_w2, k_b2 = jax.random.split(key, 5)

    N, C, H, W, COUT = 2, 4, 16, 16, 8
    x = jax.random.normal(k_x, (N, C, H, W), dtype=jnp.float32)

    ema_params = {
        "weight": jax.random.normal(k_w1, (C, COUT), dtype=jnp.float32) * 0.1,
        "bias": jax.random.normal(k_b1, (COUT,), dtype=jnp.float32) * 0.1,
    }
    new_params = {
        "weight": jax.random.normal(k_w2, (C, COUT), dtype=jnp.float32) * 0.1,
        "bias": jax.random.normal(k_b2, (COUT,), dtype=jnp.float32) * 0.1,
    }

    ema = ModelEMA(ema_params, mu=0.999)

    # ---- forward (Pallas lane-dense 1x1 conv + ReLU) ----
    y = jax.block_until_ready(ema(x))
    y_ref = jnp.maximum(
        jnp.einsum("nchw,co->nohw", x, ema_params["weight"])
        + ema_params["bias"][None, :, None, None],
        0.0,
    )
    assert y.shape == (N, COUT, H, W)
    assert jnp.allclose(y, y_ref, atol=1e-5), "forward mismatch"

    # ---- EMA update (fused pack + single in-place Pallas sweep), step mu ----
    step = 5
    mu_eff = min(0.999, (1.0 + step) / (10.0 + step))
    ema.update(new_params, step=step)
    updated = jax.tree_util.tree_map(jax.block_until_ready, ema.state_dict())
    expected = {
        name: mu_eff * ema_params[name] + (1.0 - mu_eff) * new_params[name]
        for name in ema_params
    }
    for name in ema_params:
        assert jnp.allclose(updated[name], expected[name], atol=1e-6), \
            f"EMA mismatch: {name}"

    # ---- step=None path chained on top of the previous update ----
    ema.update(new_params)
    updated2 = jax.tree_util.tree_map(jax.block_until_ready, ema.state_dict())
    expected2 = {
        name: 0.999 * expected[name] + 0.001 * new_params[name]
        for name in ema_params
    }
    for name in ema_params:
        assert jnp.allclose(updated2[name], expected2[name], atol=1e-5), \
            f"EMA (step=None) mismatch: {name}"

    # ---- flat fast path (no repacking of new params) ----
    flat_new = ema.pack_params(new_params)
    ema.update_from_flat(flat_new)
    updated3 = jax.tree_util.tree_map(jax.block_until_ready, ema.state_dict())
    for name in ema_params:
        ref = 0.999 * expected2[name] + 0.001 * new_params[name]
        assert jnp.allclose(updated3[name], ref, atol=1e-5), \
            f"EMA (flat path) mismatch: {name}"

    # ---- step < 0 path: hard copy ----
    ema2 = ModelEMA(ema_params, mu=0.999)
    ema2.update(new_params, step=-1)
    copied = jax.tree_util.tree_map(jax.block_until_ready, ema2.state_dict())
    for name in ema_params:
        assert jnp.allclose(copied[name], new_params[name]), f"copy mismatch: {name}"

    # forward still works after updates (params re-sliced from the flat buffer)
    y2 = jax.block_until_ready(ema(x))
    assert y2.shape == (N, COUT, H, W)

    print("KERNEL_OK")
</pallas_src>

<mosaic_0001>
module attributes {stable_mosaic.version = 11 : i64} {
  func.func @_conv1x1_kernel(%arg0: i32, %arg1: i32, %arg2: memref<2x4x256xf32, #tpu.memory_space<vmem>>, %arg3: memref<8x4xf32, #tpu.memory_space<vmem>>, %arg4: memref<8x1xf32, #tpu.memory_space<vmem>>, %arg5: memref<2x8x256xf32, #tpu.memory_space<vmem>>) attributes {dimension_semantics = [#tpu.dimension_semantics<parallel>, #tpu.dimension_semantics<parallel>], iteration_bounds = array<i64: 1, 1>, scalar_prefetch = 0 : i64, scratch_operands = 0 : i64, tpu.core_type = #tpu.core_type<tc>, window_params = [{transform_indices = @transform_0, window_bounds = array<i64: 2, 4, 256>}, {pipeline_mode = #tpu.pipeline_mode<synchronous>, transform_indices = @transform_1, window_bounds = array<i64: 8, 4>}, {pipeline_mode = #tpu.pipeline_mode<synchronous>, transform_indices = @transform_2, window_bounds = array<i64: 8, 1>}, {transform_indices = @transform_3, window_bounds = array<i64: 2, 8, 256>}]} {
    %c0 = arith.constant 0 : index
    %c0_0 = arith.constant 0 : index
    %0 = vector.load %arg3[%c0, %c0_0] : memref<8x4xf32, #tpu.memory_space<vmem>>, vector<8x4xf32>
    %c0_1 = arith.constant 0 : index
    %c0_2 = arith.constant 0 : index
    %1 = vector.load %arg4[%c0_1, %c0_2] : memref<8x1xf32, #tpu.memory_space<vmem>>, vector<8x1xf32>
    %c0_3 = arith.constant 0 : index
    %c0_4 = arith.constant 0 : index
    %c0_5 = arith.constant 0 : index
    %2 = vector.load %arg2[%c0_3, %c0_4, %c0_5] : memref<2x4x256xf32, #tpu.memory_space<vmem>>, vector<1x4x256xf32>
    %3 = vector.shape_cast %2 : vector<1x4x256xf32> to vector<4x256xf32>
    %4 = vector.extract_strided_slice %0 {offsets = [0, 0], sizes = [8, 1], strides = [1, 1]} : vector<8x4xf32> to vector<8x1xf32>
    %5 = vector.extract_strided_slice %3 {offsets = [0, 0], sizes = [1, 256], strides = [1, 1]} : vector<4x256xf32> to vector<1x256xf32>
    %6 = vector.broadcast %4 : vector<8x1xf32> to vector<8x256xf32>
    %7 = vector.broadcast %5 : vector<1x256xf32> to vector<8x256xf32>
    %8 = arith.mulf %6, %7 : vector<8x256xf32>
    %9 = vector.extract_strided_slice %0 {offsets = [0, 1], sizes = [8, 1], strides = [1, 1]} : vector<8x4xf32> to vector<8x1xf32>
    %10 = vector.extract_strided_slice %3 {offsets = [1, 0], sizes = [1, 256], strides = [1, 1]} : vector<4x256xf32> to vector<1x256xf32>
    %11 = vector.broadcast %9 : vector<8x1xf32> to vector<8x256xf32>
    %12 = vector.broadcast %10 : vector<1x256xf32> to vector<8x256xf32>
    %13 = arith.mulf %11, %12 : vector<8x256xf32>
    %14 = arith.addf %8, %13 : vector<8x256xf32>
    %15 = vector.extract_strided_slice %0 {offsets = [0, 2], sizes = [8, 1], strides = [1, 1]} : vector<8x4xf32> to vector<8x1xf32>
    %16 = vector.extract_strided_slice %3 {offsets = [2, 0], sizes = [1, 256], strides = [1, 1]} : vector<4x256xf32> to vector<1x256xf32>
    %17 = vector.broadcast %15 : vector<8x1xf32> to vector<8x256xf32>
    %18 = vector.broadcast %16 : vector<1x256xf32> to vector<8x256xf32>
    %19 = arith.mulf %17, %18 : vector<8x256xf32>
    %20 = arith.addf %14, %19 : vector<8x256xf32>
    %21 = vector.extract_strided_slice %0 {offsets = [0, 3], sizes = [8, 1], strides = [1, 1]} : vector<8x4xf32> to vector<8x1xf32>
    %22 = vector.extract_strided_slice %3 {offsets = [3, 0], sizes = [1, 256], strides = [1, 1]} : vector<4x256xf32> to vector<1x256xf32>
    %23 = vector.broadcast %21 : vector<8x1xf32> to vector<8x256xf32>
    %24 = vector.broadcast %22 : vector<1x256xf32> to vector<8x256xf32>
    %25 = arith.mulf %23, %24 : vector<8x256xf32>
    %26 = arith.addf %20, %25 : vector<8x256xf32>
    %27 = vector.broadcast %1 : vector<8x1xf32> to vector<8x256xf32>
    %28 = arith.addf %26, %27 : vector<8x256xf32>
    %cst = arith.constant 0.000000e+00 : f32
    %29 = vector.broadcast %cst : f32 to vector<8x256xf32>
    %30 = arith.maximumf %28, %29 : vector<8x256xf32>
    %c0_6 = arith.constant 0 : index
    %c0_7 = arith.constant 0 : index
    %c0_8 = arith.constant 0 : index
    %31 = vector.load %arg5[%c0_6, %c0_7, %c0_8] : memref<2x8x256xf32, #tpu.memory_space<vmem>>, vector<1x8x256xf32>
    %32 = vector.shape_cast %31 : vector<1x8x256xf32> to vector<8x256xf32>
    %33 = vector.shape_cast %30 : vector<8x256xf32> to vector<1x8x256xf32>
    tpu.vector_store %arg5[%c0_6, %c0_7, %c0_8], %33 {strides = array<i32>} : memref<2x8x256xf32, #tpu.memory_space<vmem>>, vector<1x8x256xf32>,
    %c1 = arith.constant 1 : index
    %c0_9 = arith.constant 0 : index
    %c0_10 = arith.constant 0 : index
    %34 = vector.load %arg2[%c1, %c0_9, %c0_10] : memref<2x4x256xf32, #tpu.memory_space<vmem>>, vector<1x4x256xf32>
    %35 = vector.shape_cast %34 : vector<1x4x256xf32> to vector<4x256xf32>
    %36 = vector.extract_strided_slice %0 {offsets = [0, 0], sizes = [8, 1], strides = [1, 1]} : vector<8x4xf32> to vector<8x1xf32>
    %37 = vector.extract_strided_slice %35 {offsets = [0, 0], sizes = [1, 256], strides = [1, 1]} : vector<4x256xf32> to vector<1x256xf32>
    %38 = vector.broadcast %36 : vector<8x1xf32> to vector<8x256xf32>
    %39 = vector.broadcast %37 : vector<1x256xf32> to vector<8x256xf32>
    %40 = arith.mulf %38, %39 : vector<8x256xf32>
    %41 = vector.extract_strided_slice %0 {offsets = [0, 1], sizes = [8, 1], strides = [1, 1]} : vector<8x4xf32> to vector<8x1xf32>
    %42 = vector.extract_strided_slice %35 {offsets = [1, 0], sizes = [1, 256], strides = [1, 1]} : vector<4x256xf32> to vector<1x256xf32>
    %43 = vector.broadcast %41 : vector<8x1xf32> to vector<8x256xf32>
    %44 = vector.broadcast %42 : vector<1x256xf32> to vector<8x256xf32>
    %45 = arith.mulf %43, %44 : vector<8x256xf32>
    %46 = arith.addf %40, %45 : vector<8x256xf32>
    %47 = vector.extract_strided_slice %0 {offsets = [0, 2], sizes = [8, 1], strides = [1, 1]} : vector<8x4xf32> to vector<8x1xf32>
    %48 = vector.extract_strided_slice %35 {offsets = [2, 0], sizes = [1, 256], strides = [1, 1]} : vector<4x256xf32> to vector<1x256xf32>
    %49 = vector.broadcast %47 : vector<8x1xf32> to vector<8x256xf32>
    %50 = vector.broadcast %48 : vector<1x256xf32> to vector<8x256xf32>
    %51 = arith.mulf %49, %50 : vector<8x256xf32>
    %52 = arith.addf %46, %51 : vector<8x256xf32>
    %53 = vector.extract_strided_slice %0 {offsets = [0, 3], sizes = [8, 1], strides = [1, 1]} : vector<8x4xf32> to vector<8x1xf32>
    %54 = vector.extract_strided_slice %35 {offsets = [3, 0], sizes = [1, 256], strides = [1, 1]} : vector<4x256xf32> to vector<1x256xf32>
    %55 = vector.broadcast %53 : vector<8x1xf32> to vector<8x256xf32>
    %56 = vector.broadcast %54 : vector<1x256xf32> to vector<8x256xf32>
    %57 = arith.mulf %55, %56 : vector<8x256xf32>
    %58 = arith.addf %52, %57 : vector<8x256xf32>
    %59 = vector.broadcast %1 : vector<8x1xf32> to vector<8x256xf32>
    %60 = arith.addf %58, %59 : vector<8x256xf32>
    %cst_11 = arith.constant 0.000000e+00 : f32
    %61 = vector.broadcast %cst_11 : f32 to vector<8x256xf32>
    %62 = arith.maximumf %60, %61 : vector<8x256xf32>
    %c1_12 = arith.constant 1 : index
    %c0_13 = arith.constant 0 : index
    %c0_14 = arith.constant 0 : index
    %63 = vector.load %arg5[%c1_12, %c0_13, %c0_14] : memref<2x8x256xf32, #tpu.memory_space<vmem>>, vector<1x8x256xf32>
    %64 = vector.shape_cast %63 : vector<1x8x256xf32> to vector<8x256xf32>
    %65 = vector.shape_cast %62 : vector<8x256xf32> to vector<1x8x256xf32>
    tpu.vector_store %arg5[%c1_12, %c0_13, %c0_14], %65 {strides = array<i32>} : memref<2x8x256xf32, #tpu.memory_space<vmem>>, vector<1x8x256xf32>,
    return
  }
  func.func @transform_0(%arg0: i32, %arg1: i32) -> (i32, i32, i32) {
    %c0_i32 = arith.constant 0 : i32
    %c0_i32_0 = arith.constant 0 : i32
    return %arg0, %c0_i32, %arg1 : i32, i32, i32
  }
  func.func @transform_1(%arg0: i32, %arg1: i32) -> (i32, i32) {
    %c0_i32 = arith.constant 0 : i32
    %c0_i32_0 = arith.constant 0 : i32
    %c0_i32_1 = arith.constant 0 : i32
    return %c0_i32, %c0_i32_0 : i32, i32
  }
  func.func @transform_2(%arg0: i32, %arg1: i32) -> (i32, i32) {
    %c0_i32 = arith.constant 0 : i32
    %c0_i32_0 = arith.constant 0 : i32
    %c0_i32_1 = arith.constant 0 : i32
    return %c0_i32, %c0_i32_0 : i32, i32
  }
  func.func @transform_3(%arg0: i32, %arg1: i32) -> (i32, i32, i32) {
    %c0_i32 = arith.constant 0 : i32
    %c0_i32_0 = arith.constant 0 : i32
    return %arg0, %c0_i32, %arg1 : i32, i32, i32
  }
}

</mosaic_0001>

<bundles_post_ra>
// kernel: conv1x1_forward.1
= control target key start
LH: loop header
LB: loop body
LE: loop exit
PB: predicated region body
PF: predicated region fallthrough
CT: control target
= control target key end

     0   :  { %v245_v0 = vmov 0   ;;  %v246_v2 = vmov 2   ;;  %v247_v3 = vmov 1   ;;  %v248_v4 = vmov 3   ;;  %s293_s1 = inlined_call_operand.vmem [shape: f32[8,4], index: 1, kind: input, shape index: {}]   ;;  %s294_s2 = inlined_call_operand.vmem [shape: f32[8,1], index: 2, kind: input, shape index: {}]   ;;  %s295_s0 = inlined_call_operand.vmem [shape: f32[2,4,256], index: 0, kind: input, shape index: {}]   ;;  %s296_s3 = inlined_call_operand.vmem [shape: f32[2,8,256], index: 3, kind: output, shape index: {}]  }
   0x1   :  { %239 = vset.pattern.permute.xlu0 %v245_v0  ;;  %v14_v1 = vld [vmem:[%s293_s1] sm:$0xff]  ;;  %241 = vset.pattern.permute.xlu1 %v246_v2  ;;  %v23_v6 = vlaneseq  ;;  %v232_v11 = vld [vmem:[%s295_s0 + $0x8] sm:$0xff] }
   0x2   :  { %19 = vperm.xlu0 %239, %v14_v1   ;;  %70 = vperm.xlu1 %241, %v14_v1   ;;  %v15_v5 = vld [vmem:[%s294_s2] sm:$0xff] }
   0x3   :  { %v24_v7 = vshrl.u32 %v23_v6, 7  ;;  %v16_v10 = vld [vmem:[%s295_s0] sm:$0xff] }
   0x5   :  { %v25_v8 = vsub.s32 0, %v24_v7  ;;  %v29_v9 = vsub.s32 4, %v24_v7  ;;  %v75_v12 = vsub.s32 2, %v24_v7  ;;  %v79_v13 = vsub.s32 6, %v24_v7 }
   0x6   :  { %240 = vset.pattern.permute.xlu0 %v247_v3  ;;  %242 = vset.pattern.permute.xlu1 %v248_v4  ;;  %v49_v14 = vsub.s32 1, %v24_v7  ;;  %v53_v15 = vsub.s32 5, %v24_v7  ;;  %v101_v16 = vsub.s32 3, %v24_v7  ;;  %v105_v17 = vsub.s32 7, %v24_v7 }
   0x7   :  { %44 = vperm.xlu0 %240, %v14_v1   ;;  %96 = vperm.xlu1 %242, %v14_v1   ;;  %v26_v18 = vrot.slane %v16_v10, %v25_v8  ;;  %v30_v19 = vrot.slane %v16_v10, %v29_v9  ;;  %v138_v20 = vrot.slane %v232_v11, %v25_v8 }
   0x8   :  { %v142_v21 = vrot.slane %v232_v11, %v29_v9  ;;  %v76_v22 = vrot.slane %v16_v10, %v75_v12  ;;  %v80_v23 = vrot.slane %v16_v10, %v79_v13  ;;  %v180_v24 = vrot.slane %v232_v11, %v75_v12 }
   0x9   :  { %v184_v25 = vrot.slane %v232_v11, %v79_v13  ;;  %v50_v26 = vrot.slane %v16_v10, %v49_v14  ;;  %v54_v27 = vrot.slane %v16_v10, %v53_v15  ;;  %v158_v28 = vrot.slane %v232_v11, %v49_v14 }
   0xa   :  { %v162_v29 = vrot.slane %v232_v11, %v53_v15  ;;  %v102_v30 = vrot.slane %v16_v10, %v101_v16  ;;  %v106_v31 = vrot.slane %v16_v10, %v105_v17  ;;  %v202_v32 = vrot.slane %v232_v11, %v101_v16 }
   0xb   :  { %243 = vset.pattern.permute.xlu1 %v245_v0  ;;  %244 = vset.pattern.permute.xlu0 %v245_v0  ;;  %v206_v33 = vrot.slane %v232_v11, %v105_v17  ;;  %v36_v35 = vrot.slane %v26_v18, %v25_v8  ;;  %v40_v36 = vrot.slane %v30_v19, %v25_v8 }
   0xc   :  { %123 = vperm.xlu1 %243, %v15_v5   ;;  %v148_v37 = vrot.slane %v138_v20, %v25_v8  ;;  %v152_v38 = vrot.slane %v142_v21, %v25_v8  ;;  %v86_v40 = vrot.slane %v76_v22, %v75_v12  ;;  %v90_v41 = vrot.slane %v80_v23, %v75_v12 }
   0xd   :  { %v190_v42 = vrot.slane %v180_v24, %v75_v12  ;;  %v194_v43 = vrot.slane %v184_v25, %v75_v12  ;;  %v60_v44 = vrot.slane %v50_v26, %v49_v14  ;;  %v64_v45 = vrot.slane %v54_v27, %v49_v14 }
   0xe   :  { %v168_v46 = vrot.slane %v158_v28, %v49_v14  ;;  %v172_v47 = vrot.slane %v162_v29, %v49_v14  ;;  %v112_v48 = vrot.slane %v102_v30, %v101_v16  ;;  %v116_v49 = vrot.slane %v106_v31, %v101_v16 }
   0xf   :  { %v212_v50 = vrot.slane %v202_v32, %v101_v16  ;;  %v216_v51 = vrot.slane %v206_v33, %v101_v16 }
  0x81   :  { %v20_v34 = vpop.permute.xlu0 %19  ;;  %v71_v39 = vpop.permute.xlu1 %70 }
  0x82   :  { %v41_v52 = vmul.f32 %v36_v35, %v20_v34  ;;  %v42_v53 = vmul.f32 %v40_v36, %v20_v34  ;;  %v153_v54 = vmul.f32 %v148_v37, %v20_v34  ;;  %v154_v55 = vmul.f32 %v152_v38, %v20_v34 }
  0x83   :  { %v91_v56 = vmul.f32 %v86_v40, %v71_v39  ;;  %v92_v57 = vmul.f32 %v90_v41, %v71_v39  ;;  %v195_v58 = vmul.f32 %v190_v42, %v71_v39  ;;  %v196_v59 = vmul.f32 %v194_v43, %v71_v39 }
  0x86   :  { %v45_v60 = vpop.permute.xlu0 %44  ;;  %v97_v61 = vpop.permute.xlu1 %96 }
  0x87   :  { %v65_v62 = vmul.f32 %v60_v44, %v45_v60  ;;  %v66_v63 = vmul.f32 %v64_v45, %v45_v60  ;;  %v173_v0 = vmul.f32 %v168_v46, %v45_v60  ;;  %v174_v1 = vmul.f32 %v172_v47, %v45_v60 }
  0x88   :  { %v117_v2 = vmul.f32 %v112_v48, %v97_v61  ;;  %v118_v3 = vmul.f32 %v116_v49, %v97_v61  ;;  %v217_v4 = vmul.f32 %v212_v50, %v97_v61  ;;  %v218_v5 = vmul.f32 %v216_v51, %v97_v61 }
  0x89   :  { %v67_v6 = vadd.f32 %v65_v62, %v41_v52  ;;  %v68_v7 = vadd.f32 %v66_v63, %v42_v53  ;;  %v175_v8 = vadd.f32 %v173_v0, %v153_v54  ;;  %v176_v9 = vadd.f32 %v174_v1, %v154_v55 }
  0x8b   :  { %v93_v10 = vadd.f32 %v91_v56, %v67_v6  ;;  %v94_v11 = vadd.f32 %v92_v57, %v68_v7  ;;  %v197_v12 = vadd.f32 %v195_v58, %v175_v8  ;;  %v198_v13 = vadd.f32 %v196_v59, %v176_v9  ;;  %v124_v14 = vpop.permute.xlu1 %123 }
  0x8d   :  { %v119_v15 = vadd.f32 %v117_v2, %v93_v10  ;;  %v120_v16 = vadd.f32 %v118_v3, %v94_v11  ;;  %v219_v17 = vadd.f32 %v217_v4, %v197_v12  ;;  %v220_v18 = vadd.f32 %v218_v5, %v198_v13 }
  0x8f   :  { %v126_v19 = vadd.f32 %v124_v14, %v119_v15  ;;  %v127_v20 = vadd.f32 %v124_v14, %v120_v16  ;;  %v221_v21 = vadd.f32 %v219_v17, %v124_v14  ;;  %v222_v22 = vadd.f32 %v220_v18, %v124_v14 }
  0x91   :  { %v128_v23 = vmax.f32 %v126_v19, 0.0  ;;  %v129_v24 = vmax.f32 %v127_v20, 0.0  ;;  %v223_v25 = vmax.f32 %v221_v21, 0.0  ;;  %v224_v26 = vmax.f32 %v222_v22, 0.0 }
  0x93   :  { %130 = vst [vmem:[%s296_s3] sm:$0xff] %v128_v23  ;;  %131 = vst [vmem:[%s296_s3 + $0x8] sm:$0xff] %v129_v24 }
  0x94   :  { %233 = vst [vmem:[%s296_s3 + $0x10] sm:$0xff] %v223_v25  ;;  %234 = vst [vmem:[%s296_s3 + $0x18] sm:$0xff] %v224_v26 }

</bundles_post_ra>
